<compile_context>
chip_gen: v6e
topology: v6e:2x2x1
jax: 0.10.0
libtpu: 0.0.40
codegen_flags: <defaults>
</compile_context>

<pallas_src>
import math

import jax
import jax.numpy as jnp
from jax.experimental import pallas as pl
from jax.experimental.pallas import tpu as pltpu

LANE = 128      # vreg lane width  -> batch (last) dim padded to this
SUBLANE = 8     # vreg sublane width -> tiny hidden/output dims padded to this


def _round_up(x, m):
    return ((x + m - 1) // m) * m


def prepare_params(w1, b1, w2, b2):
    """Pad + transpose parameters ONCE (outside the per-call path).

    w1:(F,H), b1:(H,)|(1,H), w2:(H,O), b2:(O,)|(1,O)
    Returns kernel-layout params:
      w1t:(Hp,F), b1t:(Hp,1), w2t:(Op,Hp), b2t:(Op,1)   (Hp,Op = sublane-padded)
    Zero padding is exact: padded hidden rows stay 0 through ReLU and meet
    zero W2 columns; padded output rows are sliced off in the wrapper.
    """
    f, h = w1.shape
    o = w2.shape[1]
    hp = _round_up(h, SUBLANE)
    op = _round_up(o, SUBLANE)
    w1t = jnp.pad(jnp.asarray(w1, jnp.float32).T, ((0, hp - h), (0, 0)))
    b1t = jnp.pad(jnp.reshape(jnp.asarray(b1, jnp.float32), (-1, 1)),
                  ((0, hp - h), (0, 0)))
    w2t = jnp.pad(jnp.asarray(w2, jnp.float32).T, ((0, op - o), (0, hp - h)))
    b2t = jnp.pad(jnp.reshape(jnp.asarray(b2, jnp.float32), (-1, 1)),
                  ((0, op - o), (0, 0)))
    return dict(w1t=w1t, b1t=b1t, w2t=w2t, b2t=b2t,
                n_features=f, n_hidden=h, n_output=o)


def _make_mlp_kernel(n_features, n_hidden):
    """out^T = W2^T @ relu(W1^T @ x^T + b1^T) + b2^T, batch on the lane axis."""

    def mlp_kernel(xt_ref, w1t_ref, b1t_ref, w2t_ref, b2t_ref, ot_ref):
        xt = xt_ref[...]                              # (F, TM): batch is lane-dense

        # ---- Layer 1 on the VPU -----------------------------------------
        # K = n_features is tiny: accumulate broadcast FMAs seeded with the
        # bias column (no separate bias pass, no skinny MXU push).
        if n_features <= 8:
            h = b1t_ref[...]                          # (Hp, 1) broadcasts over lanes
            for f in range(n_features):               # static, tiny trip count
                h = h + w1t_ref[:, f:f + 1] * xt[f:f + 1, :]
        else:
            h = jnp.dot(w1t_ref[...], xt,
                        preferred_element_type=jnp.float32) + b1t_ref[...]
        h = jnp.maximum(h, 0.0)                       # (Hp, TM); padded rows stay 0

        # ---- Layer 2 on the VPU -----------------------------------------
        # K = n_hidden (10) is also far below MXU breakeven: H broadcast FMAs.
        if n_hidden <= 32:
            out = b2t_ref[...]                        # (Op, 1)
            for j in range(n_hidden):                 # padded hidden rows skipped
                out = out + w2t_ref[:, j:j + 1] * h[j:j + 1, :]
        else:
            out = jnp.dot(w2t_ref[...], h,
                          preferred_element_type=jnp.float32) + b2t_ref[...]

        ot_ref[...] = out                             # (Op, TM) lane-dense store

    return mlp_kernel


def net_forward(x, params, *, max_tm=2048):
    """Pallas forward pass. x:(N,F); params from prepare_params()."""
    n, f = x.shape
    h = params["n_hidden"]
    o = params["n_output"]
    w1t, b1t, w2t, b2t = params["w1t"], params["b1t"], params["w2t"], params["b2t"]
    hp = w1t.shape[0]
    op = w2t.shape[0]

    # Batch tile: one block when the whole (lane-padded) batch fits; otherwise
    # large 2048-wide tiles to amortize the ~0.35us/step grid overhead.
    n_lane = _round_up(n, LANE)
    tm = n_lane if n_lane <= max_tm else max_tm
    n_pad = _round_up(n, tm)
    grid_steps = n_pad // tm

    # x^T: (F, N_pad) — batch on the 128-lane axis.
    xt = jnp.pad(jnp.asarray(x, jnp.float32).T, ((0, 0), (0, n_pad - n)))

    # Advisory cost with TRUE (unpadded) dims.
    cost = pl.CostEstimate(
        flops=2 * n * (f * h + h * o),
        transcendentals=0,
        bytes_accessed=4 * (n * f + f * h + h + h * o + o + n * o),
    )

    out_t = pl.pallas_call(
        _make_mlp_kernel(f, h),
        out_shape=jax.ShapeDtypeStruct((op, n_pad), jnp.float32),
        grid_spec=pltpu.PrefetchScalarGridSpec(
            num_scalar_prefetch=0,
            grid=(grid_steps,),
            in_specs=[
                pl.BlockSpec((f, tm), lambda i: (0, i)),    # x^T: streamed batch tile
                pl.BlockSpec((hp, f), lambda i: (0, 0)),    # W1^T: resident
                pl.BlockSpec((hp, 1), lambda i: (0, 0)),    # b1^T: resident
                pl.BlockSpec((op, hp), lambda i: (0, 0)),   # W2^T: resident
                pl.BlockSpec((op, 1), lambda i: (0, 0)),    # b2^T: resident
            ],
            out_specs=pl.BlockSpec((op, tm), lambda i: (0, i)),
        ),
        compiler_params=pltpu.CompilerParams(
            # Cross-TC sharding (v7x) only pays off with enough steps per core;
            # for small grids keep it a plain sequential (single-core) loop.
            dimension_semantics=("parallel",) if grid_steps >= 8 else ("arbitrary",),
        ),
        cost_estimate=cost,
    )(xt, w1t, b1t, w2t, b2t)

    return out_t[:o, :n].T


def init_linear_params(key, fan_in, fan_out):
    """Deterministic PyTorch-style Linear init: U(-1/sqrt(fan_in), +1/sqrt(fan_in))."""
    kw, kb = jax.random.split(key)
    bound = 1.0 / math.sqrt(fan_in)
    w = jax.random.uniform(kw, (fan_in, fan_out), jnp.float32, -bound, bound)
    b = jax.random.uniform(kb, (1, fan_out), jnp.float32, -bound, bound)
    return w, b


def reference_forward(x, w1, b1, w2, b2):
    hi = jax.lax.Precision.HIGHEST
    h = jnp.maximum(jnp.dot(x, w1, precision=hi) + jnp.reshape(b1, (1, -1)), 0.0)
    return jnp.dot(h, w2, precision=hi) + jnp.reshape(b2, (1, -1))


if __name__ == "__main__":
    # Shapes implied by the tutorial: n_features=2, n_hidden=10, n_output=2,
    # batch = 200 (two clusters of 100 points each).
    n_features, n_hidden, n_output = 2, 10, 2
    n_per_cluster = 100

    root = jax.random.PRNGKey(0)
    k_x0, k_x1, k_l1, k_l2 = jax.random.split(root, 4)

    # x0 ~ N(+2, 1), x1 ~ N(-2, 1), concatenated along batch (mirrors the script).
    x0 = 2.0 + jax.random.normal(k_x0, (n_per_cluster, n_features), jnp.float32)
    x1 = -2.0 + jax.random.normal(k_x1, (n_per_cluster, n_features), jnp.float32)
    x = jnp.concatenate([x0, x1], axis=0)

    w1, b1 = init_linear_params(k_l1, n_features, n_hidden)
    w2, b2 = init_linear_params(k_l2, n_hidden, n_output)

    # Parameter padding / transposition is done ONCE, outside the call path.
    params = prepare_params(w1, b1, w2, b2)

    out = net_forward(x, params)
    out = jax.block_until_ready(out)

    ref = reference_forward(x, w1, b1, w2, b2)
    assert out.shape == (2 * n_per_cluster, n_output)
    assert jnp.allclose(out, ref, atol=1e-5, rtol=1e-5)

    print("KERNEL_OK")
</pallas_src>

<mosaic_0001>
module attributes {stable_mosaic.version = 11 : i64} {
  func.func @mlp_kernel(%arg0: i32, %arg1: memref<2x256xf32, #tpu.memory_space<vmem>>, %arg2: memref<16x2xf32, #tpu.memory_space<vmem>>, %arg3: memref<16x1xf32, #tpu.memory_space<vmem>>, %arg4: memref<8x16xf32, #tpu.memory_space<vmem>>, %arg5: memref<8x1xf32, #tpu.memory_space<vmem>>, %arg6: memref<8x256xf32, #tpu.memory_space<vmem>>) attributes {dimension_semantics = [#tpu.dimension_semantics<arbitrary>], iteration_bounds = array<i64: 1>, scalar_prefetch = 0 : i64, scratch_operands = 0 : i64, tpu.core_type = #tpu.core_type<tc>, window_params = [{transform_indices = @transform_0, window_bounds = array<i64: 2, 256>}, {pipeline_mode = #tpu.pipeline_mode<synchronous>, transform_indices = @transform_1, window_bounds = array<i64: 16, 2>}, {pipeline_mode = #tpu.pipeline_mode<synchronous>, transform_indices = @transform_2, window_bounds = array<i64: 16, 1>}, {pipeline_mode = #tpu.pipeline_mode<synchronous>, transform_indices = @transform_3, window_bounds = array<i64: 8, 16>}, {pipeline_mode = #tpu.pipeline_mode<synchronous>, transform_indices = @transform_4, window_bounds = array<i64: 8, 1>}, {transform_indices = @transform_5, window_bounds = array<i64: 8, 256>}]} {
    %c0 = arith.constant 0 : index
    %c0_0 = arith.constant 0 : index
    %0 = vector.load %arg1[%c0, %c0_0] : memref<2x256xf32, #tpu.memory_space<vmem>>, vector<2x256xf32>
    %c0_1 = arith.constant 0 : index
    %c0_2 = arith.constant 0 : index
    %1 = vector.load %arg3[%c0_1, %c0_2] : memref<16x1xf32, #tpu.memory_space<vmem>>, vector<16x1xf32>
    %c0_3 = arith.constant 0 : index
    %c0_4 = arith.constant 0 : index
    %2 = vector.load %arg2[%c0_3, %c0_4] : memref<16x2xf32, #tpu.memory_space<vmem>>, vector<16x1xf32>
    %3 = vector.extract_strided_slice %0 {offsets = [0, 0], sizes = [1, 256], strides = [1, 1]} : vector<2x256xf32> to vector<1x256xf32>
    %4 = vector.broadcast %2 : vector<16x1xf32> to vector<16x256xf32>
    %5 = vector.broadcast %3 : vector<1x256xf32> to vector<16x256xf32>
    %6 = arith.mulf %4, %5 : vector<16x256xf32>
    %7 = vector.broadcast %1 : vector<16x1xf32> to vector<16x256xf32>
    %8 = arith.addf %7, %6 : vector<16x256xf32>
    %c0_5 = arith.constant 0 : index
    %c1 = arith.constant 1 : index
    %9 = vector.load %arg2[%c0_5, %c1] : memref<16x2xf32, #tpu.memory_space<vmem>>, vector<16x1xf32>
    %10 = vector.extract_strided_slice %0 {offsets = [1, 0], sizes = [1, 256], strides = [1, 1]} : vector<2x256xf32> to vector<1x256xf32>
    %11 = vector.broadcast %9 : vector<16x1xf32> to vector<16x256xf32>
    %12 = vector.broadcast %10 : vector<1x256xf32> to vector<16x256xf32>
    %13 = arith.mulf %11, %12 : vector<16x256xf32>
    %14 = arith.addf %8, %13 : vector<16x256xf32>
    %cst = arith.constant 0.000000e+00 : f32
    %15 = vector.broadcast %cst : f32 to vector<16x256xf32>
    %16 = arith.maximumf %14, %15 : vector<16x256xf32>
    %c0_6 = arith.constant 0 : index
    %c0_7 = arith.constant 0 : index
    %17 = vector.load %arg5[%c0_6, %c0_7] : memref<8x1xf32, #tpu.memory_space<vmem>>, vector<8x1xf32>
    %c0_8 = arith.constant 0 : index
    %c0_9 = arith.constant 0 : index
    %18 = vector.load %arg4[%c0_8, %c0_9] : memref<8x16xf32, #tpu.memory_space<vmem>>, vector<8x1xf32>
    %19 = vector.extract_strided_slice %16 {offsets = [0, 0], sizes = [1, 256], strides = [1, 1]} : vector<16x256xf32> to vector<1x256xf32>
    %20 = vector.broadcast %18 : vector<8x1xf32> to vector<8x256xf32>
    %21 = vector.broadcast %19 : vector<1x256xf32> to vector<8x256xf32>
    %22 = arith.mulf %20, %21 : vector<8x256xf32>
    %23 = vector.broadcast %17 : vector<8x1xf32> to vector<8x256xf32>
    %24 = arith.addf %23, %22 : vector<8x256xf32>
    %c0_10 = arith.constant 0 : index
    %c1_11 = arith.constant 1 : index
    %25 = vector.load %arg4[%c0_10, %c1_11] : memref<8x16xf32, #tpu.memory_space<vmem>>, vector<8x1xf32>
    %26 = vector.extract_strided_slice %16 {offsets = [1, 0], sizes = [1, 256], strides = [1, 1]} : vector<16x256xf32> to vector<1x256xf32>
    %27 = vector.broadcast %25 : vector<8x1xf32> to vector<8x256xf32>
    %28 = vector.broadcast %26 : vector<1x256xf32> to vector<8x256xf32>
    %29 = arith.mulf %27, %28 : vector<8x256xf32>
    %30 = arith.addf %24, %29 : vector<8x256xf32>
    %c0_12 = arith.constant 0 : index
    %c2 = arith.constant 2 : index
    %31 = vector.load %arg4[%c0_12, %c2] : memref<8x16xf32, #tpu.memory_space<vmem>>, vector<8x1xf32>
    %32 = vector.extract_strided_slice %16 {offsets = [2, 0], sizes = [1, 256], strides = [1, 1]} : vector<16x256xf32> to vector<1x256xf32>
    %33 = vector.broadcast %31 : vector<8x1xf32> to vector<8x256xf32>
    %34 = vector.broadcast %32 : vector<1x256xf32> to vector<8x256xf32>
    %35 = arith.mulf %33, %34 : vector<8x256xf32>
    %36 = arith.addf %30, %35 : vector<8x256xf32>
    %c0_13 = arith.constant 0 : index
    %c3 = arith.constant 3 : index
    %37 = vector.load %arg4[%c0_13, %c3] : memref<8x16xf32, #tpu.memory_space<vmem>>, vector<8x1xf32>
    %38 = vector.extract_strided_slice %16 {offsets = [3, 0], sizes = [1, 256], strides = [1, 1]} : vector<16x256xf32> to vector<1x256xf32>
    %39 = vector.broadcast %37 : vector<8x1xf32> to vector<8x256xf32>
    %40 = vector.broadcast %38 : vector<1x256xf32> to vector<8x256xf32>
    %41 = arith.mulf %39, %40 : vector<8x256xf32>
    %42 = arith.addf %36, %41 : vector<8x256xf32>
    %c0_14 = arith.constant 0 : index
    %c4 = arith.constant 4 : index
    %43 = vector.load %arg4[%c0_14, %c4] : memref<8x16xf32, #tpu.memory_space<vmem>>, vector<8x1xf32>
    %44 = vector.extract_strided_slice %16 {offsets = [4, 0], sizes = [1, 256], strides = [1, 1]} : vector<16x256xf32> to vector<1x256xf32>
    %45 = vector.broadcast %43 : vector<8x1xf32> to vector<8x256xf32>
    %46 = vector.broadcast %44 : vector<1x256xf32> to vector<8x256xf32>
    %47 = arith.mulf %45, %46 : vector<8x256xf32>
    %48 = arith.addf %42, %47 : vector<8x256xf32>
    %c0_15 = arith.constant 0 : index
    %c5 = arith.constant 5 : index
    %49 = vector.load %arg4[%c0_15, %c5] : memref<8x16xf32, #tpu.memory_space<vmem>>, vector<8x1xf32>
    %50 = vector.extract_strided_slice %16 {offsets = [5, 0], sizes = [1, 256], strides = [1, 1]} : vector<16x256xf32> to vector<1x256xf32>
    %51 = vector.broadcast %49 : vector<8x1xf32> to vector<8x256xf32>
    %52 = vector.broadcast %50 : vector<1x256xf32> to vector<8x256xf32>
    %53 = arith.mulf %51, %52 : vector<8x256xf32>
    %54 = arith.addf %48, %53 : vector<8x256xf32>
    %c0_16 = arith.constant 0 : index
    %c6 = arith.constant 6 : index
    %55 = vector.load %arg4[%c0_16, %c6] : memref<8x16xf32, #tpu.memory_space<vmem>>, vector<8x1xf32>
    %56 = vector.extract_strided_slice %16 {offsets = [6, 0], sizes = [1, 256], strides = [1, 1]} : vector<16x256xf32> to vector<1x256xf32>
    %57 = vector.broadcast %55 : vector<8x1xf32> to vector<8x256xf32>
    %58 = vector.broadcast %56 : vector<1x256xf32> to vector<8x256xf32>
    %59 = arith.mulf %57, %58 : vector<8x256xf32>
    %60 = arith.addf %54, %59 : vector<8x256xf32>
    %c0_17 = arith.constant 0 : index
    %c7 = arith.constant 7 : index
    %61 = vector.load %arg4[%c0_17, %c7] : memref<8x16xf32, #tpu.memory_space<vmem>>, vector<8x1xf32>
    %62 = vector.extract_strided_slice %16 {offsets = [7, 0], sizes = [1, 256], strides = [1, 1]} : vector<16x256xf32> to vector<1x256xf32>
    %63 = vector.broadcast %61 : vector<8x1xf32> to vector<8x256xf32>
    %64 = vector.broadcast %62 : vector<1x256xf32> to vector<8x256xf32>
    %65 = arith.mulf %63, %64 : vector<8x256xf32>
    %66 = arith.addf %60, %65 : vector<8x256xf32>
    %c0_18 = arith.constant 0 : index
    %c8 = arith.constant 8 : index
    %67 = vector.load %arg4[%c0_18, %c8] : memref<8x16xf32, #tpu.memory_space<vmem>>, vector<8x1xf32>
    %68 = vector.extract_strided_slice %16 {offsets = [8, 0], sizes = [1, 256], strides = [1, 1]} : vector<16x256xf32> to vector<1x256xf32>
    %69 = vector.broadcast %67 : vector<8x1xf32> to vector<8x256xf32>
    %70 = vector.broadcast %68 : vector<1x256xf32> to vector<8x256xf32>
    %71 = arith.mulf %69, %70 : vector<8x256xf32>
    %72 = arith.addf %66, %71 : vector<8x256xf32>
    %c0_19 = arith.constant 0 : index
    %c9 = arith.constant 9 : index
    %73 = vector.load %arg4[%c0_19, %c9] : memref<8x16xf32, #tpu.memory_space<vmem>>, vector<8x1xf32>
    %74 = vector.extract_strided_slice %16 {offsets = [9, 0], sizes = [1, 256], strides = [1, 1]} : vector<16x256xf32> to vector<1x256xf32>
    %75 = vector.broadcast %73 : vector<8x1xf32> to vector<8x256xf32>
    %76 = vector.broadcast %74 : vector<1x256xf32> to vector<8x256xf32>
    %77 = arith.mulf %75, %76 : vector<8x256xf32>
    %78 = arith.addf %72, %77 : vector<8x256xf32>
    %c0_20 = arith.constant 0 : index
    %c0_21 = arith.constant 0 : index
    %79 = vector.load %arg6[%c0_20, %c0_21] : memref<8x256xf32, #tpu.memory_space<vmem>>, vector<8x256xf32>
    tpu.vector_store %arg6[%c0_20, %c0_21], %78 {strides = array<i32>} : memref<8x256xf32, #tpu.memory_space<vmem>>, vector<8x256xf32>,
    return
  }
  func.func @transform_0(%arg0: i32) -> (i32, i32) {
    %c0_i32 = arith.constant 0 : i32
    %c0_i32_0 = arith.constant 0 : i32
    return %c0_i32, %arg0 : i32, i32
  }
  func.func @transform_1(%arg0: i32) -> (i32, i32) {
    %c0_i32 = arith.constant 0 : i32
    %c0_i32_0 = arith.constant 0 : i32
    %c0_i32_1 = arith.constant 0 : i32
    return %c0_i32, %c0_i32_0 : i32, i32
  }
  func.func @transform_2(%arg0: i32) -> (i32, i32) {
    %c0_i32 = arith.constant 0 : i32
    %c0_i32_0 = arith.constant 0 : i32
    %c0_i32_1 = arith.constant 0 : i32
    return %c0_i32, %c0_i32_0 : i32, i32
  }
  func.func @transform_3(%arg0: i32) -> (i32, i32) {
    %c0_i32 = arith.constant 0 : i32
    %c0_i32_0 = arith.constant 0 : i32
    %c0_i32_1 = arith.constant 0 : i32
    return %c0_i32, %c0_i32_0 : i32, i32
  }
  func.func @transform_4(%arg0: i32) -> (i32, i32) {
    %c0_i32 = arith.constant 0 : i32
    %c0_i32_0 = arith.constant 0 : i32
    %c0_i32_1 = arith.constant 0 : i32
    return %c0_i32, %c0_i32_0 : i32, i32
  }
  func.func @transform_5(%arg0: i32) -> (i32, i32) {
    %c0_i32 = arith.constant 0 : i32
    %c0_i32_0 = arith.constant 0 : i32
    return %c0_i32, %arg0 : i32, i32
  }
}

</mosaic_0001>

<bundles_post_ra>
// kernel: tpu_custom_call.1
= control target key start
LH: loop header
LB: loop body
LE: loop exit
PB: predicated region body
PF: predicated region fallthrough
CT: control target
= control target key end

     0   :  { %v343_v2 = vmov 2   ;;  %v344_v3 = vmov 1   ;;  %s456_s0 = inlined_call_operand.vmem [shape: f32[2,256], index: 0, kind: input, shape index: {}]   ;;  %s457_s1 = inlined_call_operand.vmem [shape: f32[16,2], index: 1, kind: input, shape index: {}]   ;;  %s458_s2 = inlined_call_operand.vmem [shape: f32[16,1], index: 2, kind: input, shape index: {}]   ;;  %s459_s3 = inlined_call_operand.vmem [shape: f32[8,16], index: 3, kind: input, shape index: {}]   ;;  %s460_s4 = inlined_call_operand.vmem [shape: f32[8,1], index: 4, kind: input, shape index: {}]   ;;  %s461_s5 = inlined_call_operand.hbm [shape: f32[8,256], index: 5, kind: output, shape index: {}]  }
   0x1   :  { %v112_v0 = vld [vmem:[%s459_s3] sm:$0xff]  ;;  %309 = vset.pattern.permute.xlu0 %v343_v2  ;;  %306 = vset.pattern.permute.xlu1 %v344_v3 }
   0x2   :  { %v24_v1 = vld [vmem:[%s457_s1] sm:$0xff]  ;;  %152 = vperm.xlu0 %309, %v112_v0  }
   0x3   :  { %74 = vperm.xlu1 %306, %v24_v1  }
   0x4   :  { %10 = vsyncpa [#allocation3], 0  ;;  %v345_v4 = vmov 0   ;;  %v22_v5 = vld [vmem:[%s458_s2] sm:$0xff]  ;;  %v25_v7 = vld [vmem:[%s457_s1 + $0x8] sm:$0xff]  ;;  %v346_v9 = vmov 3   ;;  %v37_v16 = vlaneseq }
   0x5   :  { %v111_v6 = vld [vmem:[%s460_s4] sm:$0xff]  ;;  %v23_v8 = vld [vmem:[%s458_s2 + $0x8] sm:$0xff]  ;;  %v347_v10 = vmov 5   ;;  %v348_v11 = vmov 8   ;;  %v349_v12 = vmov 4   ;;  %v350_v13 = vmov 9  }
   0x6   :  { %310 = vset.pattern.permute.xlu0 %v345_v4  ;;  %v351_v14 = vmov 6   ;;  %v352_v15 = vmov 7   ;;  %v402_v17 = vshrl.u32 %v37_v16, 7  ;;  %v21_v20 = vld [vmem:[%s456_s0] sm:$0xf]  ;;  %s353_s0 = smov [#allocation2]  }
   0x7   :  { %307 = vset.pattern.permute.xlu1 %v345_v4  ;;  %28 = vperm.xlu0 %310, %v24_v1   ;;  %s287_s4 = sshll.u32 %s353_s0, 4  ;;  %s288_s4 = int_to_ptr.vmem [resolvable:$true] %s287_s4 }
   0x8   :  { %115 = vperm.xlu1 %307, %v112_v0   ;;  %v405_v18 = vsub.s32 0, %v402_v17  ;;  %v43_v19 = vsub.s32 2, %v402_v17  ;;  %v412_v21 = vsub.s32 1, %v402_v17  ;;  %v87_v22 = vsub.s32 3, %v402_v17  ;;  %s321_s29 = scalar_lea.vmem %s288_s4, 256  ;;  %p326_p1 = scmp.lt.s32.totalorder %s288_s4, %s288_s4 }
   0x9   :  { %p322_p0 = scmp.ne.s32.totalorder %s288_s4, %s321_s29  ;;  %p327_p2 = scmp.lt.s32.totalorder %s321_s29, %s321_s29 }
   0xa   :  { %v40_v23 = vrot.slane %v21_v20, %v405_v18  ;;  %v44_v24 = vrot.slane %v21_v20, %v43_v19  ;;  %v84_v27 = vrot.slane %v21_v20, %v412_v21  ;;  %v88_v28 = vrot.slane %v21_v20, %v87_v22 }
   0xb   :  { %61 = vperm.xlu0 %310, %v22_v5   ;;  %p328_p3 = por %p327_p2, %p326_p1 }
   0xc   :  { %308 = vset.pattern.permute.xlu1 %v344_v3  ;;  %v50_v29 = vrot.slane %v40_v23, %v405_v18  ;;  %v54_v30 = vrot.slane %v44_v24, %v405_v18  ;;  %v94_v33 = vrot.slane %v84_v27, %v412_v21  ;;  %v98_v34 = vrot.slane %v88_v28, %v412_v21 }
   0xd   :  { %136 = vperm.xlu1 %308, %v112_v0   ;;  %v221_v27 = vsub.s32 6, %v402_v17  ;;  %p329_p4 = pnand %p328_p3, %p322_p0 }
   0xf   :  { %130 = vperm.xlu0 %310, %v111_v6   ;;  %v189_v6 = vsub.s32 4, %v402_v17 }
  0x11   :  { %311 = vset.pattern.permute.xlu1 %v345_v4 }
  0x12   :  { %33 = vperm.xlu1 %311, %v25_v7  }
  0x13   :  { %66 = vperm.xlu0 %310, %v23_v8  }
  0x16   :  { %312 = vset.pattern.permute.xlu1 %v346_v9 }
  0x17   :  { %168 = vperm.xlu1 %312, %v112_v0   ;;  %315 = vset.pattern.permute.xlu0 %v347_v10 }
  0x18   :  { %200 = vperm.xlu0 %315, %v112_v0  }
  0x1b   :  { %313 = vset.pattern.permute.xlu1 %v344_v3 }
  0x1c   :  { %78 = vperm.xlu1 %313, %v25_v7   ;;  %318 = vset.pattern.permute.xlu0 %v348_v11 }
  0x1d   :  { %248 = vperm.xlu0 %318, %v112_v0  }
  0x20   :  { %314 = vset.pattern.permute.xlu1 %v349_v12 }
  0x21   :  { %184 = vperm.xlu1 %314, %v112_v0   ;;  %320 = vset.pattern.permute.xlu0 %v350_v13 }
  0x25   :  { %316 = vset.pattern.permute.xlu1 %v351_v14 }
  0x26   :  { %216 = vperm.xlu1 %316, %v112_v0  }
  0x2a   :  { %317 = vset.pattern.permute.xlu1 %v352_v15  ;;  %v205_v15 = vsub.s32 5, %v402_v17 }
  0x2b   :  { %232 = vperm.xlu1 %317, %v112_v0  }
  0x2f   :  { %319 = vset.pattern.permute.xlu1 %v350_v13 }
  0x30   :  { %264 = vperm.xlu1 %319, %v112_v0  }
  0x7d   :  { %v153_v26 = vpop.permute.xlu0 %152 }
  0x7e   :  { %v75_v25 = vpop.permute.xlu1 %74 }
  0x7f   :  { %v99_v38 = vmul.f32 %v94_v33, %v75_v25  ;;  %v100_v39 = vmul.f32 %v98_v34, %v75_v25 }
  0x82   :  { %v29_v31 = vpop.permute.xlu0 %28 }
  0x83   :  { %v116_v32 = vpop.permute.xlu1 %115  ;;  %v55_v35 = vmul.f32 %v50_v29, %v29_v31  ;;  %v56_v36 = vmul.f32 %v54_v30, %v29_v31 }
  0x86   :  { %v62_v37 = vpop.permute.xlu0 %61 }
  0x87   :  { %v69_v40 = vadd.f32 %v62_v37, %v55_v35  ;;  %v70_v41 = vadd.f32 %v62_v37, %v56_v36 }
  0x88   :  { %v137_v42 = vpop.permute.xlu1 %136 }
  0x89   :  { %v103_v43 = vadd.f32 %v99_v38, %v69_v40  ;;  %v104_v44 = vadd.f32 %v100_v39, %v70_v41  ;;  %v237_v38 = vsub.s32 7, %v402_v17 }
  0x8a   :  { %v131_v54 = vpop.permute.xlu0 %130 }
  0x8b   :  { %v421_v45 = vmax.f32 %v103_v43, 0.0  ;;  %v423_v46 = vmax.f32 %v104_v44, 0.0 }
  0x8d   :  { %v34_v47 = vpop.permute.xlu1 %33  ;;  %v142_v48 = vrot.slane %v421_v45, %v412_v21  ;;  %v146_v49 = vrot.slane %v423_v46, %v412_v21  ;;  %v121_v50 = vrot.slane %v421_v45, %v405_v18  ;;  %v125_v51 = vrot.slane %v423_v46, %v405_v18 }
  0x8e   :  { %v158_v55 = vrot.slane %v421_v45, %v43_v19  ;;  %v162_v56 = vrot.slane %v423_v46, %v43_v19  ;;  %v57_v2 = vmul.f32 %v50_v29, %v34_v47  ;;  %v58_v3 = vmul.f32 %v54_v30, %v34_v47  ;;  %v67_v4 = vpop.permute.xlu0 %66 }
  0x8f   :  { %v126_v52 = vmul.f32 %v121_v50, %v116_v32  ;;  %v127_v53 = vmul.f32 %v125_v51, %v116_v32  ;;  %v147_v57 = vmul.f32 %v142_v48, %v137_v42  ;;  %v148_v58 = vmul.f32 %v146_v49, %v137_v42 }
  0x90   :  { %v163_v0 = vmul.f32 %v158_v55, %v153_v26  ;;  %v164_v1 = vmul.f32 %v162_v56, %v153_v26  ;;  %v174_v9 = vrot.slane %v421_v45, %v87_v22  ;;  %v178_v10 = vrot.slane %v423_v46, %v87_v22 }
  0x91   :  { %v133_v59 = vadd.f32 %v131_v54, %v126_v52  ;;  %v134_v60 = vadd.f32 %v131_v54, %v127_v53  ;;  %v71_v16 = vadd.f32 %v67_v4, %v57_v2  ;;  %v72_v19 = vadd.f32 %v67_v4, %v58_v3 }
  0x92   :  { %v169_v61 = vpop.permute.xlu1 %168  ;;  %v190_v20 = vrot.slane %v421_v45, %v189_v6  ;;  %v194_v23 = vrot.slane %v423_v46, %v189_v6  ;;  %v206_v32 = vrot.slane %v421_v45, %v205_v15  ;;  %v222_v42 = vrot.slane %v421_v45, %v221_v27 }
  0x93   :  { %v149_v62 = vadd.f32 %v147_v57, %v133_v59  ;;  %v150_v63 = vadd.f32 %v148_v58, %v134_v60  ;;  %v179_v13 = vmul.f32 %v174_v9, %v169_v61  ;;  %v180_v14 = vmul.f32 %v178_v10, %v169_v61  ;;  %v201_v28 = vpop.permute.xlu0 %200 }
  0x94   :  { %v211_v36 = vmul.f32 %v206_v32, %v201_v28  ;;  %v226_v43 = vrot.slane %v423_v46, %v221_v27  ;;  %v238_v52 = vrot.slane %v421_v45, %v237_v38  ;;  %v242_v53 = vrot.slane %v423_v46, %v237_v38 }
  0x95   :  { %v165_v7 = vadd.f32 %v163_v0, %v149_v62  ;;  %v166_v8 = vadd.f32 %v164_v1, %v150_v63 }
  0x97   :  { %v79_v5 = vpop.permute.xlu1 %78  ;;  %v181_v24 = vadd.f32 %v179_v13, %v165_v7  ;;  %v182_v25 = vadd.f32 %v180_v14, %v166_v8 }
  0x98   :  { %v101_v11 = vmul.f32 %v94_v33, %v79_v5  ;;  %v102_v12 = vmul.f32 %v98_v34, %v79_v5  ;;  %v210_v33 = vrot.slane %v423_v46, %v205_v15  ;;  %v249_v17 = vpop.permute.xlu0 %248 }
  0x9a   :  { %v105_v29 = vadd.f32 %v101_v11, %v71_v16  ;;  %v106_v22 = vadd.f32 %v102_v12, %v72_v19  ;;  %v212_v37 = vmul.f32 %v210_v33, %v201_v28 }
  0x9c   :  { %v185_v26 = vpop.permute.xlu1 %184  ;;  %v109_v39 = vmax.f32 %v105_v29, 0.0  ;;  %v110_v40 = vmax.f32 %v106_v22, 0.0 }
  0x9d   :  { %v195_v30 = vmul.f32 %v190_v20, %v185_v26  ;;  %v196_v31 = vmul.f32 %v194_v23, %v185_v26 }
  0x9e   :  { %v254_v50 = vrot.slane %v109_v39, %v405_v18  ;;  %v258_v51 = vrot.slane %v110_v40, %v405_v18  ;;  %v270_v63 = vrot.slane %v109_v39, %v412_v21  ;;  %v274_v0 = vrot.slane %v110_v40, %v412_v21 }
  0x9f   :  { %v197_v34 = vadd.f32 %v195_v30, %v181_v24  ;;  %v198_v35 = vadd.f32 %v196_v31, %v182_v25 }
  0xa0   :  { %v259_v59 = vmul.f32 %v254_v50, %v249_v17  ;;  %v260_v60 = vmul.f32 %v258_v51, %v249_v17 }
  0xa1   :  { %v217_v41 = vpop.permute.xlu1 %216  ;;  %v213_v44 = vadd.f32 %v211_v36, %v197_v34  ;;  %v214_v47 = vadd.f32 %v212_v37, %v198_v35 }
  0xa2   :  { %v227_v48 = vmul.f32 %v222_v42, %v217_v41  ;;  %v228_v49 = vmul.f32 %v226_v43, %v217_v41 }
  0xa4   :  { %v229_v55 = vadd.f32 %v227_v48, %v213_v44  ;;  %v230_v56 = vadd.f32 %v228_v49, %v214_v47 }
  0xa6   :  { %v233_v54 = vpop.permute.xlu1 %232 }
  0xa7   :  { %v243_v57 = vmul.f32 %v238_v52, %v233_v54  ;;  %v244_v58 = vmul.f32 %v242_v53, %v233_v54 }
  0xa9   :  { %v245_v61 = vadd.f32 %v243_v57, %v229_v55  ;;  %v246_v62 = vadd.f32 %v244_v58, %v230_v56 }
  0xab   :  { %v265_v1 = vpop.permute.xlu1 %264  ;;  %v261_v18 = vadd.f32 %v259_v59, %v245_v61  ;;  %v262_v2 = vadd.f32 %v260_v60, %v246_v62 }
  0xac   :  { %v275_v45 = vmul.f32 %v270_v63, %v265_v1  ;;  %v276_v46 = vmul.f32 %v274_v0, %v265_v1 }
  0xae   :  { %v277_v3 = vadd.f32 %v275_v45, %v261_v18  ;;  %v278_v4 = vadd.f32 %v276_v46, %v262_v2 }
  0xb0   :  { %279 = vst [vmem:[#allocation2] sm:$0xff] %v277_v3  ;;  %280 = vst [vmem:[#allocation2 + $0x8] sm:$0xff] %v278_v4 }
  0xb1   :  { %332 = shalt.err (!%p329_p4)
}
  0xb2   :  { %290 = dma.vmem_to_hbm [thread:$0]  %s288_s4, 256, %s461_s5, [#allocation3]  }
  0xb3   :  { %341 = dma.done.wait [#allocation3], 256  }
  0xb4   :  { %342 = vsyncadd [#allocation3], 4294967040 }
  0xb5   :  { %294 = vsyncpa [#allocation3], 1 }

</bundles_post_ra>
